<compile_context>
chip_gen: v7x
topology: tpu7x:2x2x1
jax: 0.10.0
libtpu: 0.0.40
codegen_flags: <defaults>
</compile_context>

<pallas_src>
import jax
import jax.numpy as jnp
import numpy as np
from jax.experimental import pallas as pl
from jax.experimental.pallas import tpu as pltpu


# ----------------------------- Pallas kernel ------------------------------ #
def wdl_kernel(x_ref, a1_ref, w2t_ref, col_ref, out_ref, oh_ref):
    ids = x_ref[...]                               # (F, TB) int32, batch on lanes
    num_fields, tb = ids.shape
    h2_units, h1_units = w2t_ref.shape
    vpad = oh_ref.shape[0] // num_fields

    # Build the concatenated per-field one-hot (F*Vpad, TB) in VMEM scratch.
    v_iota = jax.lax.broadcasted_iota(jnp.int32, (vpad, tb), 0)
    for f in range(num_fields):                    # static unroll (F is small)
        onehot = (ids[f, :][None, :] == v_iota).astype(jnp.float32)   # (Vpad, TB)
        oh_ref[f * vpad:(f + 1) * vpad, :] = onehot

    # One MXU pass: fused embedding gather + first dense layer + wide sum.
    # a1_ref rows 0..H1-1 -> h1 pre-activation, row H1 -> wide linear sum.
    hw = jnp.dot(a1_ref[...], oh_ref[...],
                 preferred_element_type=jnp.float32)                  # (HR, TB)
    wide = hw[h1_units:h1_units + 1, :]                               # (1, TB)

    col = col_ref[...]                                                # (H1+2H2+1, 1)
    b1 = col[0:h1_units, :]
    b2 = col[h1_units:h1_units + h2_units, :]
    wo = col[h1_units + h2_units:h1_units + 2 * h2_units, :]
    bo = col[h1_units + 2 * h2_units:h1_units + 2 * h2_units + 1, :]  # (1, 1)

    h1 = jnp.maximum(hw[0:h1_units, :] + b1, 0.0)                     # (H1, TB)
    h2 = jnp.dot(w2t_ref[...], h1,
                 preferred_element_type=jnp.float32) + b2
    h2 = jnp.maximum(h2, 0.0)                                         # (H2, TB)

    # Final H2 -> 1 projection: VPU multiply + sublane reduce (no N=1 matmul).
    deep = jnp.sum(h2 * wo, axis=0, keepdims=True)                    # (1, TB)

    out_ref[...] = jax.nn.sigmoid(deep + wide + bo)                   # (1, TB)


# ------------------------------ host wrapper ------------------------------- #
def _pick_lane_tile():
    """TB=256 fills v6e/v7x's 256-wide MXU and gives an even 2-step grid for
    v7x's two TensorCores; v5e's MXU is 128-wide so TB=128 is already full."""
    try:
        kind = jax.devices()[0].device_kind.lower()
    except Exception:
        kind = ""
    if "v5" in kind:
        return 128
    return 256


def wdl_forward(x_user, x_item, params, *, tb=None):
    if tb is None:
        tb = _pick_lane_tile()

    emb = params["emb_table"].astype(jnp.float32)        # (V, D)
    lin = params["lin_table"].astype(jnp.float32)        # (V, 1)
    lin_bias = params["lin_bias"].astype(jnp.float32)    # (1, 1)
    w1, b1 = params["w1"], params["b1"]                  # (F*D, H1), (1, H1)
    w2, b2 = params["w2"], params["b2"]                  # (H1, H2),  (1, H2)
    wo, bo = params["wo"], params["bo"]                  # (H2, 1),   (1, 1)

    x = jnp.concatenate([x_user, x_item], axis=1).astype(jnp.int32)    # (B, F)
    batch, num_fields = x.shape
    vocab, embed_dim = emb.shape
    h1_units = w1.shape[1]
    h2_units = w2.shape[1]
    vpad = pl.cdiv(vocab, 128) * 128

    # Fold the embedding table into the first dense layer (gather is linear):
    #   A[f, h, v] = sum_d W1[f*D + d, h] * E[v, d]
    w1_3d = w1.reshape(num_fields, embed_dim, h1_units)
    a1 = jnp.einsum("fdh,vd->fhv", w1_3d, emb)                         # (F, H1, V)
    a1 = jnp.pad(a1, ((0, 0), (0, 0), (0, vpad - vocab)))              # (F, H1, Vpad)
    a1_h = jnp.transpose(a1, (1, 0, 2)).reshape(h1_units,
                                                num_fields * vpad)     # (H1, F*Vpad)

    # Wide (linear) path rides along as one extra output row of the same slab.
    lin_row = jnp.pad(lin[:, 0], (0, vpad - vocab))                    # (Vpad,)
    wide_row = jnp.tile(lin_row, num_fields)[None, :]                  # (1, F*Vpad)

    hrows = pl.cdiv(h1_units + 1, 8) * 8
    a1_packed = jnp.concatenate([a1_h, wide_row], axis=0)              # (H1+1, F*Vpad)
    a1_packed = jnp.pad(a1_packed,
                        ((0, hrows - (h1_units + 1)), (0, 0)))         # (HR, F*Vpad)

    w2t = w2.T                                                         # (H2, H1)

    # Pack all small column operands into one VMEM operand:
    #   [b1 (H1) | b2 (H2) | wo (H2) | bo + lin_bias (1)]
    col = jnp.concatenate([b1.reshape(-1, 1), b2.reshape(-1, 1),
                           wo.reshape(-1, 1),
                           (bo + lin_bias).reshape(-1, 1)], axis=0)    # (H1+2H2+1, 1)

    # Pad batch to a multiple of the lane tile and put batch on lanes.
    b_pad = pl.cdiv(batch, tb) * tb
    x_t = jnp.pad(x, ((0, b_pad - batch), (0, 0))).T                   # (F, B_pad)

    cost = pl.CostEstimate(
        flops=2 * b_pad * (hrows * num_fields * vpad
                           + h2_units * h1_units + h2_units + 2),
        transcendentals=b_pad,
        bytes_accessed=int(x_t.size * 4 + b_pad * 4 + a1_packed.size * 4
                           + w2t.size * 4 + col.size * 4),
    )

    out = pl.pallas_call(
        wdl_kernel,
        out_shape=jax.ShapeDtypeStruct((1, b_pad), jnp.float32),
        grid_spec=pltpu.PrefetchScalarGridSpec(
            num_scalar_prefetch=0,
            grid=(b_pad // tb,),
            in_specs=[
                pl.BlockSpec((num_fields, tb), lambda i: (0, i)),        # ids (streamed)
                pl.BlockSpec((hrows, num_fields * vpad),
                             lambda i: (0, 0)),                          # folded W1/emb + wide
                pl.BlockSpec((h2_units, h1_units), lambda i: (0, 0)),    # W2^T
                pl.BlockSpec((col.shape[0], 1), lambda i: (0, 0)),       # packed b1|b2|wo|bo
            ],
            out_specs=pl.BlockSpec((1, tb), lambda i: (0, i)),
            scratch_shapes=[
                pltpu.VMEM((num_fields * vpad, tb), jnp.float32),        # one-hot slab
            ],
        ),
        compiler_params=pltpu.CompilerParams(
            dimension_semantics=("parallel",),
        ),
        cost_estimate=cost,
    )(x_t, a1_packed, w2t, col)

    return out[0, :batch]                                              # (B,)


# --------------------------- pure-JAX reference --------------------------- #
def wdl_reference(x_user, x_item, params):
    x = jnp.concatenate([x_user, x_item], axis=1)
    B, F = x.shape
    D = params["emb_table"].shape[1]
    emb = jnp.take(params["emb_table"], x, axis=0).reshape(B, F * D)
    h = jax.nn.relu(emb @ params["w1"] + params["b1"])
    h = jax.nn.relu(h @ params["w2"] + params["b2"])
    deep = h @ params["wo"] + params["bo"]
    wide = jnp.sum(jnp.take(params["lin_table"], x, axis=0)[..., 0],
                   axis=1, keepdims=True) + params["lin_bias"][0, 0]
    return jax.nn.sigmoid((wide + deep)[:, 0])


# -------------------------------- main ------------------------------------ #
if __name__ == "__main__":
    VOCAB = 100
    USER_FIELDS, ITEM_FIELDS = 2, 2
    NUM_FIELDS = USER_FIELDS + ITEM_FIELDS
    EMBED_DIM = 16
    HIDDEN_DIMS = (32, 16)
    INPUT_DIM = NUM_FIELDS * EMBED_DIM
    B = 300   # not a multiple of the lane tile -> exercises batch padding

    key = jax.random.PRNGKey(0)
    keys = jax.random.split(key, 10)

    params = {
        "emb_table": 0.05 * jax.random.normal(keys[0], (VOCAB, EMBED_DIM), jnp.float32),
        "lin_table": 0.05 * jax.random.normal(keys[1], (VOCAB, 1), jnp.float32),
        "lin_bias":  jnp.zeros((1, 1), jnp.float32),
        "w1": 0.1 * jax.random.normal(keys[2], (INPUT_DIM, HIDDEN_DIMS[0]), jnp.float32),
        "b1": jnp.zeros((1, HIDDEN_DIMS[0]), jnp.float32),
        "w2": 0.1 * jax.random.normal(keys[3], (HIDDEN_DIMS[0], HIDDEN_DIMS[1]), jnp.float32),
        "b2": jnp.zeros((1, HIDDEN_DIMS[1]), jnp.float32),
        "wo": 0.1 * jax.random.normal(keys[4], (HIDDEN_DIMS[1], 1), jnp.float32),
        "bo": jnp.zeros((1, 1), jnp.float32),
    }

    x_user = jax.random.randint(keys[5], (B, USER_FIELDS), 0, VOCAB, jnp.int32)
    x_item = jax.random.randint(keys[6], (B, ITEM_FIELDS), 0, VOCAB, jnp.int32)

    out = wdl_forward(x_user, x_item, params)
    out = jax.block_until_ready(out)

    ref = jax.block_until_ready(wdl_reference(x_user, x_item, params))
    np.testing.assert_allclose(np.asarray(out), np.asarray(ref),
                               rtol=1e-4, atol=1e-4)

    assert out.shape == (B,)
    print("KERNEL_OK")
</pallas_src>

<mosaic_0001>
module attributes {stable_mosaic.version = 11 : i64} {
  func.func @wdl_kernel(%arg0: i32, %arg1: memref<4x256xi32, #tpu.memory_space<vmem>>, %arg2: memref<40x512xf32, #tpu.memory_space<vmem>>, %arg3: memref<16x32xf32, #tpu.memory_space<vmem>>, %arg4: memref<65x1xf32, #tpu.memory_space<vmem>>, %arg5: memref<1x256xf32, #tpu.memory_space<vmem>>, %arg6: memref<512x256xf32, #tpu.memory_space<vmem>>) attributes {dimension_semantics = [#tpu.dimension_semantics<parallel>], iteration_bounds = array<i64: 2>, scalar_prefetch = 0 : i64, scratch_operands = 1 : i64, tpu.core_type = #tpu.core_type<tc>, window_params = [{transform_indices = @transform_0, window_bounds = array<i64: 4, 256>}, {pipeline_mode = #tpu.pipeline_mode<synchronous>, transform_indices = @transform_1, window_bounds = array<i64: 40, 512>}, {pipeline_mode = #tpu.pipeline_mode<synchronous>, transform_indices = @transform_2, window_bounds = array<i64: 16, 32>}, {pipeline_mode = #tpu.pipeline_mode<synchronous>, transform_indices = @transform_3, window_bounds = array<i64: 65, 1>}, {transform_indices = @transform_4, window_bounds = array<i64: 1, 256>}]} {
    %c0 = arith.constant 0 : index
    %c0_0 = arith.constant 0 : index
    %0 = vector.load %arg1[%c0, %c0_0] : memref<4x256xi32, #tpu.memory_space<vmem>>, vector<4x256xi32>
    %1 = tpu.iota {dimensions = array<i32: 0>} : vector<128x256xi32>
    %2 = vector.extract_strided_slice %0 {offsets = [0, 0], sizes = [1, 256], strides = [1, 1]} : vector<4x256xi32> to vector<1x256xi32>
    %3 = vector.shape_cast %2 : vector<1x256xi32> to vector<256xi32>
    %4 = vector.shape_cast %3 : vector<256xi32> to vector<1x256xi32>
    %5 = vector.broadcast %4 : vector<1x256xi32> to vector<128x256xi32>
    %6 = arith.cmpi eq, %5, %1 : vector<128x256xi32>
    %7 = arith.extui %6 : vector<128x256xi1> to vector<128x256xi32>
    %8 = arith.sitofp %7 : vector<128x256xi32> to vector<128x256xf32>
    %c0_1 = arith.constant 0 : index
    %c0_2 = arith.constant 0 : index
    %9 = vector.load %arg6[%c0_1, %c0_2] : memref<512x256xf32, #tpu.memory_space<vmem>>, vector<128x256xf32>
    tpu.vector_store %arg6[%c0_1, %c0_2], %8 {strides = array<i32>} : memref<512x256xf32, #tpu.memory_space<vmem>>, vector<128x256xf32>,
    %10 = vector.extract_strided_slice %0 {offsets = [1, 0], sizes = [1, 256], strides = [1, 1]} : vector<4x256xi32> to vector<1x256xi32>
    %11 = vector.shape_cast %10 : vector<1x256xi32> to vector<256xi32>
    %12 = vector.shape_cast %11 : vector<256xi32> to vector<1x256xi32>
    %13 = vector.broadcast %12 : vector<1x256xi32> to vector<128x256xi32>
    %14 = arith.cmpi eq, %13, %1 : vector<128x256xi32>
    %15 = arith.extui %14 : vector<128x256xi1> to vector<128x256xi32>
    %16 = arith.sitofp %15 : vector<128x256xi32> to vector<128x256xf32>
    %c128 = arith.constant 128 : index
    %c0_3 = arith.constant 0 : index
    %17 = vector.load %arg6[%c128, %c0_3] : memref<512x256xf32, #tpu.memory_space<vmem>>, vector<128x256xf32>
    tpu.vector_store %arg6[%c128, %c0_3], %16 {strides = array<i32>} : memref<512x256xf32, #tpu.memory_space<vmem>>, vector<128x256xf32>,
    %18 = vector.extract_strided_slice %0 {offsets = [2, 0], sizes = [1, 256], strides = [1, 1]} : vector<4x256xi32> to vector<1x256xi32>
    %19 = vector.shape_cast %18 : vector<1x256xi32> to vector<256xi32>
    %20 = vector.shape_cast %19 : vector<256xi32> to vector<1x256xi32>
    %21 = vector.broadcast %20 : vector<1x256xi32> to vector<128x256xi32>
    %22 = arith.cmpi eq, %21, %1 : vector<128x256xi32>
    %23 = arith.extui %22 : vector<128x256xi1> to vector<128x256xi32>
    %24 = arith.sitofp %23 : vector<128x256xi32> to vector<128x256xf32>
    %c256 = arith.constant 256 : index
    %c0_4 = arith.constant 0 : index
    %25 = vector.load %arg6[%c256, %c0_4] : memref<512x256xf32, #tpu.memory_space<vmem>>, vector<128x256xf32>
    tpu.vector_store %arg6[%c256, %c0_4], %24 {strides = array<i32>} : memref<512x256xf32, #tpu.memory_space<vmem>>, vector<128x256xf32>,
    %26 = vector.extract_strided_slice %0 {offsets = [3, 0], sizes = [1, 256], strides = [1, 1]} : vector<4x256xi32> to vector<1x256xi32>
    %27 = vector.shape_cast %26 : vector<1x256xi32> to vector<256xi32>
    %28 = vector.shape_cast %27 : vector<256xi32> to vector<1x256xi32>
    %29 = vector.broadcast %28 : vector<1x256xi32> to vector<128x256xi32>
    %30 = arith.cmpi eq, %29, %1 : vector<128x256xi32>
    %31 = arith.extui %30 : vector<128x256xi1> to vector<128x256xi32>
    %32 = arith.sitofp %31 : vector<128x256xi32> to vector<128x256xf32>
    %c384 = arith.constant 384 : index
    %c0_5 = arith.constant 0 : index
    %33 = vector.load %arg6[%c384, %c0_5] : memref<512x256xf32, #tpu.memory_space<vmem>>, vector<128x256xf32>
    tpu.vector_store %arg6[%c384, %c0_5], %32 {strides = array<i32>} : memref<512x256xf32, #tpu.memory_space<vmem>>, vector<128x256xf32>,
    %c0_6 = arith.constant 0 : index
    %c0_7 = arith.constant 0 : index
    %34 = vector.load %arg2[%c0_6, %c0_7] : memref<40x512xf32, #tpu.memory_space<vmem>>, vector<40x512xf32>
    %c0_8 = arith.constant 0 : index
    %c0_9 = arith.constant 0 : index
    %35 = vector.load %arg6[%c0_8, %c0_9] : memref<512x256xf32, #tpu.memory_space<vmem>>, vector<512x256xf32>
    %cst = arith.constant dense<0.000000e+00> : vector<40x256xf32>
    %36 = tpu.matmul %34, %35, %cst {dimension_numbers = #tpu.dot_dimension_numbers<[1], [0], [0], [1], [0, 0, 1, 1], [], []>} : vector<40x512xf32>, vector<512x256xf32>, vector<40x256xf32> -> vector<40x256xf32>
    %37 = vector.extract_strided_slice %36 {offsets = [32, 0], sizes = [1, 256], strides = [1, 1]} : vector<40x256xf32> to vector<1x256xf32>
    %c0_10 = arith.constant 0 : index
    %c0_11 = arith.constant 0 : index
    %38 = vector.load %arg4[%c0_10, %c0_11] : memref<65x1xf32, #tpu.memory_space<vmem>>, vector<65x1xf32>
    %39 = vector.extract_strided_slice %38 {offsets = [0, 0], sizes = [32, 1], strides = [1, 1]} : vector<65x1xf32> to vector<32x1xf32>
    %40 = vector.extract_strided_slice %38 {offsets = [32, 0], sizes = [16, 1], strides = [1, 1]} : vector<65x1xf32> to vector<16x1xf32>
    %41 = vector.extract_strided_slice %38 {offsets = [48, 0], sizes = [16, 1], strides = [1, 1]} : vector<65x1xf32> to vector<16x1xf32>
    %42 = vector.extract_strided_slice %38 {offsets = [64, 0], sizes = [1, 1], strides = [1, 1]} : vector<65x1xf32> to vector<1x1xf32>
    %43 = vector.extract_strided_slice %36 {offsets = [0, 0], sizes = [32, 256], strides = [1, 1]} : vector<40x256xf32> to vector<32x256xf32>
    %44 = vector.broadcast %39 : vector<32x1xf32> to vector<32x256xf32>
    %45 = arith.addf %43, %44 : vector<32x256xf32>
    %cst_12 = arith.constant 0.000000e+00 : f32
    %46 = vector.broadcast %cst_12 : f32 to vector<32x256xf32>
    %47 = arith.maximumf %45, %46 : vector<32x256xf32>
    %c0_13 = arith.constant 0 : index
    %c0_14 = arith.constant 0 : index
    %48 = vector.load %arg3[%c0_13, %c0_14] : memref<16x32xf32, #tpu.memory_space<vmem>>, vector<16x32xf32>
    %cst_15 = arith.constant dense<0.000000e+00> : vector<16x256xf32>
    %49 = tpu.matmul %48, %47, %cst_15 {dimension_numbers = #tpu.dot_dimension_numbers<[1], [0], [0], [1], [0, 0, 1, 1], [], []>} : vector<16x32xf32>, vector<32x256xf32>, vector<16x256xf32> -> vector<16x256xf32>
    %50 = vector.broadcast %40 : vector<16x1xf32> to vector<16x256xf32>
    %51 = arith.addf %49, %50 : vector<16x256xf32>
    %cst_16 = arith.constant 0.000000e+00 : f32
    %52 = vector.broadcast %cst_16 : f32 to vector<16x256xf32>
    %53 = arith.maximumf %51, %52 : vector<16x256xf32>
    %54 = vector.broadcast %41 : vector<16x1xf32> to vector<16x256xf32>
    %55 = arith.mulf %53, %54 : vector<16x256xf32>
    %cst_17 = arith.constant dense<0.000000e+00> : vector<256xf32>
    %56 = vector.multi_reduction <add>, %55, %cst_17 [0] : vector<16x256xf32> to vector<256xf32>
    %57 = vector.shape_cast %56 : vector<256xf32> to vector<1x256xf32>
    %58 = arith.addf %57, %37 : vector<1x256xf32>
    %59 = vector.broadcast %42 : vector<1x1xf32> to vector<1x256xf32>
    %60 = arith.addf %58, %59 : vector<1x256xf32>
    %61 = arith.negf %60 : vector<1x256xf32>
    %62 = math.exp %61 : vector<1x256xf32>
    %cst_18 = arith.constant 1.000000e+00 : f32
    %63 = vector.broadcast %cst_18 : f32 to vector<1x256xf32>
    %64 = arith.addf %63, %62 : vector<1x256xf32>
    %65 = arith.divf %63, %64 : vector<1x256xf32>
    %c0_19 = arith.constant 0 : index
    %c0_20 = arith.constant 0 : index
    %66 = vector.load %arg5[%c0_19, %c0_20] : memref<1x256xf32, #tpu.memory_space<vmem>>, vector<1x256xf32>
    tpu.vector_store %arg5[%c0_19, %c0_20], %65 {strides = array<i32>} : memref<1x256xf32, #tpu.memory_space<vmem>>, vector<1x256xf32>,
    return
  }
  func.func @transform_0(%arg0: i32) -> (i32, i32) {
    %c0_i32 = arith.constant 0 : i32
    %c0_i32_0 = arith.constant 0 : i32
    return %c0_i32, %arg0 : i32, i32
  }
  func.func @transform_1(%arg0: i32) -> (i32, i32) {
    %c0_i32 = arith.constant 0 : i32
    %c0_i32_0 = arith.constant 0 : i32
    %c0_i32_1 = arith.constant 0 : i32
    return %c0_i32, %c0_i32_0 : i32, i32
  }
  func.func @transform_2(%arg0: i32) -> (i32, i32) {
    %c0_i32 = arith.constant 0 : i32
    %c0_i32_0 = arith.constant 0 : i32
    %c0_i32_1 = arith.constant 0 : i32
    return %c0_i32, %c0_i32_0 : i32, i32
  }
  func.func @transform_3(%arg0: i32) -> (i32, i32) {
    %c0_i32 = arith.constant 0 : i32
    %c0_i32_0 = arith.constant 0 : i32
    %c0_i32_1 = arith.constant 0 : i32
    return %c0_i32, %c0_i32_0 : i32, i32
  }
  func.func @transform_4(%arg0: i32) -> (i32, i32) {
    %c0_i32 = arith.constant 0 : i32
    %c0_i32_0 = arith.constant 0 : i32
    return %c0_i32, %arg0 : i32, i32
  }
}

</mosaic_0001>

<bundles_post_ra>
// kernel: tpu_custom_call.1
= control target key start
LH: loop header
LB: loop body
LE: loop exit
PB: predicated region body
PF: predicated region fallthrough
CT: control target
= control target key end

     0   :  { %9 = vsyncpa [#allocation4], 0  ;;  %s2679_s0 = inlined_call_operand.vmem [shape: s32[4,512], index: 0, kind: input, shape index: {}]   ;;  %s2680_s1 = inlined_call_operand.hbm [shape: f32[40,512], index: 1, kind: input, shape index: {}]   ;;  %s2681_s2 = inlined_call_operand.vmem [shape: f32[16,32], index: 2, kind: input, shape index: {}]   ;;  %s2682_s3 = inlined_call_operand.vmem [shape: f32[65,1], index: 3, kind: input, shape index: {}]   ;;  %s2683_s4 = inlined_call_operand.hbm [shape: f32[1,512], index: 4, kind: output, shape index: {}]  }
   0x1   :  { %10 = vsyncpa [#allocation5], 0 }
   0x2   :  { %12 = vsyncpa [#allocation5 + $0x1], 0  ;;  %s2069_s15 = smov 0   ;;  %s2071_s16 = smov 0  }
   0x3   :  { %s2073_s17 = smov 0   ;;  %s2075_s18 = smov 0  }
   0x4 LB: > { %s2090_s19 = sadd.s32 4294967295, %s2034_s18   ;;  %s1449_s20 = sadd.s32 4294967294, %s2034_s18   ;;  %s2034_s18 = sphi %s2075_s18, %s2699_s18   ;;  %s2030_s17 = sphi %s2073_s17, %s2698_s17   ;;  %s2026_s16 = sphi %s2071_s16, %s2697_s16   ;;  %s2022_s15 = sphi %s2069_s15, %s2696_s15  }
   0x5   : > { %s2094_s21 = sadd.s32 1, %s2034_s18   ;;  %s114_s22 = sadd.s32 1, %s2030_s17 }
   0x6   : > { %s111_s23 = ssub.s32 %s2034_s18, %s2094_s21  ;;  %p124_p0 = scmp.ne.s32.totalorder %s2030_s17, %s2026_s16 }
   0x7   : > { %p112_p1 = scmp.eq.s32.totalorder %s111_s23, 0  ;;  %p125_p2 = scmp.eq.s32.totalorder %s2090_s19, 1 }
   0x8   : > { %p130_p3 = scmp.ne.s32.totalorder %s2026_s16, %s2022_s15  ;;  %p131_p4 = scmp.eq.s32.totalorder %s1449_s20, 1 }
   0x9   : > { %s2105_s24 = scalar_select %p112_p1, %s2030_s17, %s114_s22  }
   0xa   : > { %p2107_p5 = por %p125_p2, %p124_p0  ;;  %p2111_p6 = por %p131_p4, %p130_p3 }
   0xb   : > { %p1450_p7 = scmp.ge.s32.totalorder %s2034_s18, 1  ;;  %p138_p8 = scmp.lt.s32.totalorder %s2034_s18, 3 }
   0xc   : > { %s2687_s25 = scalar_select %p2107_p5, 1, 0 }
   0xd   : > { %s2688_s26 = scalar_select %p2111_p6, 1, 0 }
   0xe   : > { %p2684_p9 = scmp.eq.s32.totalorder %s2090_s19, 0  ;;  %p2118_p10 = pnand %p1450_p7, %p138_p8 }
   0xf   : > { %s2036_s28 = smov [#allocation3]   ;;  %s1940_s7 = scalar_lea.hbm %s2680_s1, 2560 }
  0x10   : > { %s2689_s27 = scalar_select %p2118_p10, 1, 0 }
  0x11   : > { %s150_s29 = sshll.u32 %s2036_s28, 4  ;;  %p1880_p11 = pneg %p2118_p10  ;;  %s151_s29 = int_to_ptr.vmem [resolvable:$true] %s150_s29 }
  0x12   : > { %p1941_p13 = scmp.ne.s32.totalorder %s2680_s1, %s1940_s7  ;;  %p1947_p3 = scmp.lt.u32.totalorder %s1940_s7, %s2680_s1 }
  0x13   : > { %p2126_p12 = pnand %p2684_p9, %p1880_p11 }
  0x15   : > { %p1942_p0 = pneg %p2126_p12 }
  0x17   : > { %p1943_p1 = pnand %p1942_p0, %p1941_p13 }
  0x19   : > { %p1944_p2 = pneg %p1943_p1 }
  0x1b   : > { %p1949_p4 = pnand %p1947_p3, %p1944_p2 }
  0x1d   : > { %1952 = shalt.err (!%p1949_p4)
}
  0x1e   : > { %s1953_s12 = scalar_lea.vmem %s151_s29, 2560  ;;  %p1961_p9 = scmp.lt.s32.totalorder %s151_s29, %s151_s29 }
  0x1f   : > { %p1954_p7 = scmp.ne.s32.totalorder %s151_s29, %s1953_s12  ;;  %p1962_p6 = scmp.lt.s32.totalorder %s1953_s12, %s1953_s12 }
  0x21   : > { %p1956_p8 = pnand %p1954_p7, %p1942_p0  ;;  %p1963_p5 = por %p1962_p6, %p1961_p9 }
  0x23   : > { %p1957_p11 = pneg %p1956_p8 }
  0x25   : > { %p1964_p10 = pnand %p1963_p5, %p1957_p11 }
  0x27   : > { %1967 = shalt.err (!%p1964_p10)
}
  0x28   : > { %s2037_s13 = smov 512   ;;  %s2038_s14 = smov 32  }
  0x29   : > { %1883 = dma.hbm_to_vmem [thread:$0]  (!%p2126_p12), %s2680_s1, 2560, %s151_s29, [#allocation4], %s2037_s13, %s2037_s13, %s2038_s14  }
  0x2a   : > { %p2691_p13 = scmp.ne.s32.totalorder %s2689_s27, 0 }
  0x2b   : > { %p2692_p1 = scmp.eq.s32.totalorder (!%p2691_p13), %s2090_s19, 0 }
  0x2c   : > { %181 = sbr.rel (%p2691_p13) target bundleno = 651 (0x28b), region = 36 }
  0x33   : > { %2013 = dma.done.wait (%p2692_p1), [#allocation4], 2560   ;;  %p2693_p0 = pmov %p2692_p1 }
  0x34   : > { %s1456_s23 = sshll.u32 %s2090_s19, 1  ;;  %v215_v0 = vlaneseq  ;;  %v2039_v1 = vmov 0   ;;  %v809_v9 = vld [vmem:[#allocation3 + $0x8] sm:$0xff]  ;;  %v811_v14 = vld [vmem:[#allocation3 + $0x18] sm:$0xff]  ;;  %v2040_v21 = vmov 1.0|1.0  }
  0x35   : > { %2015 = vsyncadd (%p2693_p0), [#allocation4], 4294964736  ;;  %p208_p5 = scmp.lt.s32.totalorder %s1456_s23, 3  ;;  %1930 = vset.pattern.permute.xlu0 %v2039_v1  ;;  %1931 = vset.pattern.permute.xlu1 %v2039_v1  ;;  %v1146_v30 = vld [vmem:[%s2682_s3] sm:$0xff]  ;;  %v1147_v47 = vld [vmem:[%s2682_s3 + $0x8] sm:$0xff]  ;;  %s204_s10 = sand.u32 1, %s2026_s16  }
  0x36   : > { %v2154_v2 = vshrl.u32 %v215_v0, 7  ;;  %1020 = vmatprep.mubr.f32.mxu1 %v809_v9  ;;  %1115 = vmatprep.mubr.f32.mxu0 %v811_v14  ;;  %v1148_v48 = vld [vmem:[%s2682_s3 + $0x10] sm:$0xff]  ;;  %v1150_v49 = vld [vmem:[%s2682_s3 + $0x20] sm:$0xff]  ;;  %v1149_v50 = vld [vmem:[%s2682_s3 + $0x18] sm:$0xff]  ;;  %s1455_s11 = sshll.u32 %s204_s10, 1  ;;  %s1595_s12 = sshll.u32 %s2090_s19, 5 }
  0x37   : > { %s2701_s23 = smov (!%p208_p5, %s1456_s23), 3  ;;  %1157 = vperm.xlu0 %1930, %v1146_v30   ;;  %1167 = vperm.xlu1 %1931, %v1148_v48   ;;  %v1152_v51 = vld [vmem:[%s2682_s3 + $0x30] sm:$0xff]  ;;  %v1151_v52 = vld [vmem:[%s2682_s3 + $0x28] sm:$0xff]  ;;  %v1154_v53 = vld [vmem:[%s2682_s3 + $0x40] sm:$0x1]  ;;  %s206_s13 = scalar_lea.vmem [#allocation6], %s1455_s11 }
  0x38   : > { %v234_v3 = vsub.s32 0, %v2154_v2  ;;  %v238_v4 = vsub.s32 4, %v2154_v2  ;;  %v522_v5 = vsub.s32 2, %v2154_v2  ;;  %s1457_s27 = sshll.u32 %s2701_s23, 2  ;;  %v526_v6 = vsub.s32 6, %v2154_v2  ;;  %v1153_v54 = vld [vmem:[%s2682_s3 + $0x38] sm:$0xff]  ;;  %s2637_s23 = scalar_lea.hbm %s2683_s4, %s1595_s12 }
  0x39   : > { %s211_s30 = scalar_lea.vmem %s2679_s0, %s1457_s27  ;;  %v2166_v8 = vadd.s32 8, %v2154_v2  ;;  %v2173_v15 = vadd.s32 16, %v2154_v2  ;;  %v2176_v16 = vadd.s32 24, %v2154_v2  ;;  %v2208_v22 = vadd.s32 32, %v2154_v2  ;;  %v808_v55 = vld [vmem:[#allocation3] sm:$0xff]  ;;  %v810_v56 = vld [vmem:[#allocation3 + $0x10] sm:$0xff] }
  0x3a   : > { %v2163_v7 = vld [vmem:[%s211_s30] sm:$0xff]  ;;  %v2211_v23 = vadd.s32 40, %v2154_v2  ;;  %v2234_v24 = vadd.s32 48, %v2154_v2  ;;  %v2237_v25 = vadd.s32 56, %v2154_v2  ;;  %v2260_v26 = vadd.s32 64, %v2154_v2  ;;  %v813_v57 = vld [vmem:[#allocation3 + $0x28] sm:$0xff] }
  0x3b   : > { %v239_v10 = vrot.slane %v2163_v7, %v238_v4  ;;  %v527_v11 = vrot.slane %v2163_v7, %v526_v6  ;;  %v235_v12 = vrot.slane %v2163_v7, %v234_v3  ;;  %v523_v13 = vrot.slane %v2163_v7, %v522_v5  ;;  %1162 = vperm.xlu0 %1930, %v1147_v47   ;;  %v815_v58 = vld [vmem:[#allocation3 + $0x38] sm:$0xff]  ;;  %v812_v59 = vld [vmem:[#allocation3 + $0x20] sm:$0xff]  ;;  %v814_v60 = vld [vmem:[#allocation3 + $0x30] sm:$0xff]  ;;  %s1378_s14 = sshll.u32 %s206_s13, 4  ;;  %s1364_s27 = scalar_lea.sflag [#allocation5], %s204_s10  ;;  %s2639_s14 = int_to_ptr.vmem [resolvable:$true] %s1378_s14 }
  0x3c   : > { %v2263_v27 = vadd.s32 72, %v2154_v2  ;;  %v2286_v28 = vadd.s32 80, %v2154_v2  ;;  %v2289_v29 = vadd.s32 88, %v2154_v2  ;;  %v2310_v31 = vadd.s32 96, %v2154_v2  ;;  %1172 = vperm.xlu1 %1931, %v1149_v50   ;;  %v817_v61 = vld [vmem:[#allocation3 + $0x48] sm:$0xff]  ;;  %v819_v62 = vld [vmem:[#allocation3 + $0x58] sm:$0xff] }
  0x3d   : > { %v2178_v17 = vrot.slane %v239_v10, %v234_v3  ;;  %v2180_v18 = vrot.slane %v527_v11, %v522_v5  ;;  %v2182_v19 = vrot.slane %v235_v12, %v234_v3  ;;  %v2184_v20 = vrot.slane %v523_v13, %v522_v5  ;;  %v816_v63 = vld [vmem:[#allocation3 + $0x40] sm:$0xff]  ;;  %v818_v1 = vld [vmem:[#allocation3 + $0x50] sm:$0xff]  ;;  %v821_v3 = vld [vmem:[#allocation3 + $0x68] sm:$0xff]  ;;  %s1968_s28 = scalar_lea.vmem %s2639_s14, 32  ;;  %p2694_p9 = scmp.ne.s32.totalorder %s2687_s25, 0 }
  0x3e   : > { %v2318_v32 = vadd.s32 104, %v2154_v2  ;;  %v382_v33 = vsub.s32 5, %v2154_v2  ;;  %v670_v34 = vsub.s32 7, %v2154_v2  ;;  %v378_v35 = vsub.s32 1, %v2154_v2  ;;  %v823_v4 = vld [vmem:[#allocation3 + $0x78] sm:$0xff]  ;;  %v820_v5 = vld [vmem:[#allocation3 + $0x60] sm:$0xff]  ;;  %p1969_p6 = scmp.ne.s32.totalorder %s2639_s14, %s1968_s28 }
  0x3f   : > { %vm249_vm0 = vcmp.eq.s32.totalorder %v2178_v17, %v2154_v2  ;;  %vm251_vm1 = vcmp.eq.s32.totalorder %v2178_v17, %v2166_v8  ;;  %vm537_vm2 = vcmp.eq.s32.totalorder %v2180_v18, %v2154_v2  ;;  %vm539_vm3 = vcmp.eq.s32.totalorder %v2180_v18, %v2166_v8  ;;  %1195 = vperm.xlu0 %1930, %v1150_v49   ;;  %v822_v6 = vld [vmem:[#allocation3 + $0x70] sm:$0xff]  ;;  %v824_v9 = vld [vmem:[#allocation3 + $0x80] sm:$0xff]  ;;  %s2043_s19 = smov [#allocation6]  }
  0x40   : > { %vm1724_vm4 = vmpackc.low %vm251_vm1, %vm249_vm0  ;;  %vm248_vm5 = vcmp.eq.s32.totalorder %v2182_v19, %v2154_v2  ;;  %vm250_vm6 = vcmp.eq.s32.totalorder %v2182_v19, %v2166_v8  ;;  %vm536_vm7 = vcmp.eq.s32.totalorder %v2184_v20, %v2154_v2  ;;  %vm538_vm8 = vcmp.eq.s32.totalorder %v2184_v20, %v2166_v8  ;;  %1200 = vperm.xlu1 %1931, %v1151_v52   ;;  %v826_v10 = vld [vmem:[#allocation3 + $0x90] sm:$0xff]  ;;  %p1970_p10 = pnand %p1969_p6, %p2694_p9  ;;  %s1972_s29 = sshll.u32 %s2043_s19, 4  ;;  %s1973_s29 = int_to_ptr.vmem [resolvable:$false] %s1972_s29 }
  0x41   : > { %1725 = vmatprep.subr.msk.bf16.mxu1 %vm1724_vm4, %v2040_v21  ;;  %vm1788_vm9 = vmpackc.low %vm539_vm3, %vm537_vm2  ;;  %vm253_vm10 = vcmp.eq.s32.totalorder %v2178_v17, %v2173_v15  ;;  %vm255_vm11 = vcmp.eq.s32.totalorder %v2178_v17, %v2176_v16  ;;  %vm541_vm13 = vcmp.eq.s32.totalorder %v2180_v18, %v2173_v15  ;;  %vm543_vm14 = vcmp.eq.s32.totalorder %v2180_v18, %v2176_v16  ;;  %s1974_s30 = scalar_lea.vmem %s1973_s29, 64  ;;  %p1975_p2 = scmp.lt.s32.totalorder %s2639_s14, %s1973_s29 }
  0x42   : > { %1789 = vmatprep.subr.msk.bf16.mxu0 %vm1788_vm9, %v2040_v21  ;;  %vm1726_vm12 = vmpackc.low %vm250_vm6, %vm248_vm5  ;;  %vm252_vm0 = vcmp.eq.s32.totalorder %v2182_v19, %v2173_v15  ;;  %vm254_vm1 = vcmp.eq.s32.totalorder %v2182_v19, %v2176_v16  ;;  %vm540_vm3 = vcmp.eq.s32.totalorder %v2184_v20, %v2173_v15  ;;  %vm542_vm4 = vcmp.eq.s32.totalorder %v2184_v20, %v2176_v16  ;;  %p1971_p12 = pneg %p1970_p10  ;;  %p1976_p3 = scmp.lt.s32.totalorder %s1974_s30, %s1968_s28 }
  0x43   : > { %1727 = vmatpush1.bf16.msk.msra.mxu1 %vm1726_vm12, %v2040_v21  ;;  %vm1790_vm15 = vmpackc.low %vm538_vm8, %vm536_vm7  ;;  %vm257_vm6 = vcmp.eq.s32.totalorder %v2178_v17, %v2208_v22  ;;  %vm259_vm7 = vcmp.eq.s32.totalorder %v2178_v17, %v2211_v23  ;;  %vm545_vm9 = vcmp.eq.s32.totalorder %v2180_v18, %v2208_v22  ;;  %vm256_vm12 = vcmp.eq.s32.totalorder %v2182_v19, %v2208_v22 }
  0x44   : > { %1791 = vmatpush1.bf16.msk.msra.mxu0 %vm1790_vm15, %v2040_v21  ;;  %vm1728_vm2 = vmpackc.low %vm255_vm11, %vm253_vm10  ;;  %vm547_vm10 = vcmp.eq.s32.totalorder %v2180_v18, %v2211_v23  ;;  %vm544_vm15 = vcmp.eq.s32.totalorder %v2184_v20, %v2208_v22  ;;  %v2351_v36 = vadd.s32 112, %v2154_v2  ;;  %v666_v37 = vsub.s32 3, %v2154_v2  ;;  %1293 = vperm.xlu0 %1930, %v1152_v51   ;;  %p1977_p4 = por %p1976_p3, %p1975_p2 }
  0x45   : > { %1729 = vmatprep.subr.msk.bf16.mxu1 %vm1728_vm2, %v2040_v21  ;;  %vm1792_vm5 = vmpackc.low %vm543_vm14, %vm541_vm13  ;;  %vm258_vm13 = vcmp.eq.s32.totalorder %v2182_v19, %v2211_v23  ;;  %vm261_vm2 = vcmp.eq.s32.totalorder %v2178_v17, %v2234_v24  ;;  %v2363_v38 = vadd.s32 120, %v2154_v2  ;;  %v383_v39 = vrot.slane %v2163_v7, %v382_v33  ;;  %1298 = vperm.xlu1 %1931, %v1153_v54  }
  0x46   : > { %1793 = vmatprep.subr.msk.bf16.mxu0 %vm1792_vm5, %v2040_v21  ;;  %vm1730_vm8 = vmpackc.low %vm254_vm1, %vm252_vm0  ;;  %vm546_vm0 = vcmp.eq.s32.totalorder %v2184_v20, %v2211_v23  ;;  %vm549_vm5 = vcmp.eq.s32.totalorder %v2180_v18, %v2234_v24  ;;  %v671_v40 = vrot.slane %v2163_v7, %v670_v34  ;;  %v379_v41 = vrot.slane %v2163_v7, %v378_v35  ;;  %p1978_p7 = pnand %p1977_p4, %p1971_p12 }
  0x47   : > { %1731 = vmatpush1.bf16.msk.msra.mxu1 %vm1730_vm8, %v2040_v21  ;;  %vm1794_vm11 = vmpackc.low %vm542_vm4, %vm540_vm3  ;;  %vm263_vm3 = vcmp.eq.s32.totalorder %v2178_v17, %v2237_v25  ;;  %vm260_vm8 = vcmp.eq.s32.totalorder %v2182_v19, %v2234_v24  ;;  %v667_v42 = vrot.slane %v2163_v7, %v666_v37  ;;  %v2404_v43 = vrot.slane %v383_v39, %v378_v35  ;;  %v825_v7 = vld [vmem:[#allocation3 + $0x88] sm:$0xff] }
  0x48   : > { %1795 = vmatpush1.bf16.msk.msra.mxu0 %vm1794_vm11, %v2040_v21  ;;  %vm1732_vm14 = vmpackc.low %vm259_vm7, %vm257_vm6  ;;  %vm551_vm6 = vcmp.eq.s32.totalorder %v2180_v18, %v2237_v25  ;;  %vm548_vm11 = vcmp.eq.s32.totalorder %v2184_v20, %v2234_v24  ;;  %v2411_v44 = vrot.slane %v671_v40, %v666_v37  ;;  %v2418_v45 = vrot.slane %v379_v41, %v378_v35 }
  0x49   : > { %1733 = vmatprep.subr.msk.bf16.mxu1 %vm1732_vm14, %v2040_v21  ;;  %vm1796_vm1 = vmpackc.low %vm547_vm10, %vm545_vm9  ;;  %vm262_vm9 = vcmp.eq.s32.totalorder %v2182_v19, %v2237_v25  ;;  %vm265_vm14 = vcmp.eq.s32.totalorder %v2178_v17, %v2260_v26  ;;  %v2425_v46 = vrot.slane %v667_v42, %v666_v37  ;;  %1323 = vperm.xlu0 %1930, %v1154_v53   ;;  %v2041_v11 = vmov 0.0  }
  0x4a   : > { %1797 = vmatprep.subr.msk.bf16.mxu0 %vm1796_vm1, %v2040_v21  ;;  %vm1734_vm4 = vmpackc.low %vm258_vm13, %vm256_vm12  ;;  %vm550_vm12 = vcmp.eq.s32.totalorder %v2184_v20, %v2237_v25  ;;  %vm553_vm1 = vcmp.eq.s32.totalorder %v2180_v18, %v2260_v26 }
  0x4b   : > { %1735 = vmatpush1.bf16.msk.msra.mxu1 %vm1734_vm4, %v2040_v21  ;;  %vm1798_vm7 = vmpackc.low %vm546_vm0, %vm544_vm15  ;;  %vm267_vm15 = vcmp.eq.s32.totalorder %v2178_v17, %v2263_v27  ;;  %vm264_vm4 = vcmp.eq.s32.totalorder %v2182_v19, %v2260_v26 }
  0x4c   : > { %1799 = vmatpush1.bf16.msk.msra.mxu0 %vm1798_vm7, %v2040_v21  ;;  %vm1736_vm10 = vmpackc.low %vm263_vm3, %vm261_vm2  ;;  %vm555_vm2 = vcmp.eq.s32.totalorder %v2180_v18, %v2263_v27  ;;  %vm552_vm7 = vcmp.eq.s32.totalorder %v2184_v20, %v2260_v26 }
  0x4d   : > { %1737 = vmatprep.subr.msk.bf16.mxu1 %vm1736_vm10, %v2040_v21  ;;  %vm1800_vm13 = vmpackc.low %vm551_vm6, %vm549_vm5  ;;  %vm266_vm5 = vcmp.eq.s32.totalorder %v2182_v19, %v2263_v27  ;;  %vm269_vm10 = vcmp.eq.s32.totalorder %v2178_v17, %v2286_v28 }
  0x4e   : > { %1801 = vmatprep.subr.msk.bf16.mxu0 %vm1800_vm13, %v2040_v21  ;;  %vm1738_vm0 = vmpackc.low %vm262_vm9, %vm260_vm8  ;;  %vm554_vm8 = vcmp.eq.s32.totalorder %v2184_v20, %v2263_v27  ;;  %vm557_vm13 = vcmp.eq.s32.totalorder %v2180_v18, %v2286_v28 }
  0x4f   : > { %1739 = vmatpush1.bf16.msk.msra.mxu1 %vm1738_vm0, %v2040_v21  ;;  %vm1802_vm3 = vmpackc.low %vm550_vm12, %vm548_vm11  ;;  %vm271_vm11 = vcmp.eq.s32.totalorder %v2178_v17, %v2289_v29  ;;  %vm268_vm0 = vcmp.eq.s32.totalorder %v2182_v19, %v2286_v28 }
  0x50   : > { %1803 = vmatpush1.bf16.msk.msra.mxu0 %vm1802_vm3, %v2040_v21  ;;  %vm1740_vm6 = vmpackc.low %vm267_vm15, %vm265_vm14  ;;  %vm559_vm14 = vcmp.eq.s32.totalorder %v2180_v18, %v2289_v29  ;;  %vm556_vm3 = vcmp.eq.s32.totalorder %v2184_v20, %v2286_v28 }
  0x51   : > { %1741 = vmatprep.subr.msk.bf16.mxu1 %vm1740_vm6, %v2040_v21  ;;  %vm1804_vm9 = vmpackc.low %vm555_vm2, %vm553_vm1  ;;  %vm270_vm1 = vcmp.eq.s32.totalorder %v2182_v19, %v2289_v29  ;;  %vm273_vm6 = vcmp.eq.s32.totalorder %v2178_v17, %v2310_v31 }
  0x52   : > { %1805 = vmatprep.subr.msk.bf16.mxu0 %vm1804_vm9, %v2040_v21  ;;  %vm1742_vm12 = vmpackc.low %vm266_vm5, %vm264_vm4  ;;  %vm558_vm4 = vcmp.eq.s32.totalorder %v2184_v20, %v2289_v29  ;;  %vm561_vm9 = vcmp.eq.s32.totalorder %v2180_v18, %v2310_v31 }
  0x53   : > { %1743 = vmatpush1.bf16.msk.msra.mxu1 %vm1742_vm12, %v2040_v21  ;;  %vm1806_vm15 = vmpackc.low %vm554_vm8, %vm552_vm7  ;;  %vm275_vm7 = vcmp.eq.s32.totalorder %v2178_v17, %v2318_v32  ;;  %vm272_vm12 = vcmp.eq.s32.totalorder %v2182_v19, %v2310_v31 }
  0x54   : > { %1807 = vmatpush1.bf16.msk.msra.mxu0 %vm1806_vm15, %v2040_v21  ;;  %vm1744_vm2 = vmpackc.low %vm271_vm11, %vm269_vm10  ;;  %vm563_vm10 = vcmp.eq.s32.totalorder %v2180_v18, %v2318_v32  ;;  %vm560_vm15 = vcmp.eq.s32.totalorder %v2184_v20, %v2310_v31 }
  0x55   : > { %1745 = vmatprep.subr.msk.bf16.mxu1 %vm1744_vm2, %v2040_v21  ;;  %vm1808_vm5 = vmpackc.low %vm559_vm14, %vm557_vm13  ;;  %vm274_vm13 = vcmp.eq.s32.totalorder %v2182_v19, %v2318_v32  ;;  %vm277_vm2 = vcmp.eq.s32.totalorder %v2178_v17, %v2351_v36 }
  0x56   : > { %1809 = vmatprep.subr.msk.bf16.mxu0 %vm1808_vm5, %v2040_v21  ;;  %vm1746_vm8 = vmpackc.low %vm270_vm1, %vm268_vm0  ;;  %vm562_vm0 = vcmp.eq.s32.totalorder %v2184_v20, %v2318_v32  ;;  %vm565_vm5 = vcmp.eq.s32.totalorder %v2180_v18, %v2351_v36 }
  0x57   : > { %1747 = vmatpush1.bf16.msk.msra.mxu1 %vm1746_vm8, %v2040_v21  ;;  %vm1810_vm11 = vmpackc.low %vm558_vm4, %vm556_vm3  ;;  %vm279_vm3 = vcmp.eq.s32.totalorder %v2178_v17, %v2363_v38  ;;  %vm276_vm8 = vcmp.eq.s32.totalorder %v2182_v19, %v2351_v36 }
  0x58   : > { %1811 = vmatpush1.bf16.msk.msra.mxu0 %vm1810_vm11, %v2040_v21  ;;  %vm1748_vm14 = vmpackc.low %vm275_vm7, %vm273_vm6  ;;  %vm567_vm6 = vcmp.eq.s32.totalorder %v2180_v18, %v2363_v38  ;;  %vm564_vm11 = vcmp.eq.s32.totalorder %v2184_v20, %v2351_v36 }
  0x59   : > { %1749 = vmatprep.subr.msk.bf16.mxu1 %vm1748_vm14, %v2040_v21  ;;  %vm1812_vm1 = vmpackc.low %vm563_vm10, %vm561_vm9  ;;  %vm278_vm9 = vcmp.eq.s32.totalorder %v2182_v19, %v2363_v38  ;;  %vm393_vm14 = vcmp.eq.s32.totalorder %v2404_v43, %v2154_v2 }
  0x5a   : > { %1813 = vmatprep.subr.msk.bf16.mxu0 %vm1812_vm1, %v2040_v21  ;;  %vm1750_vm4 = vmpackc.low %vm274_vm13, %vm272_vm12  ;;  %vm566_vm12 = vcmp.eq.s32.totalorder %v2184_v20, %v2363_v38  ;;  %vm681_vm1 = vcmp.eq.s32.totalorder %v2411_v44, %v2154_v2 }
  0x5b   : > { %1751 = vmatpush1.bf16.msk.msra.mxu1 %vm1750_vm4, %v2040_v21  ;;  %vm1814_vm7 = vmpackc.low %vm562_vm0, %vm560_vm15  ;;  %vm395_vm15 = vcmp.eq.s32.totalorder %v2404_v43, %v2166_v8  ;;  %vm392_vm4 = vcmp.eq.s32.totalorder %v2418_v45, %v2154_v2 }
  0x5c   : > { %1815 = vmatpush1.bf16.msk.msra.mxu0 %vm1814_vm7, %v2040_v21  ;;  %vm1752_vm10 = vmpackc.low %vm279_vm3, %vm277_vm2  ;;  %vm683_vm2 = vcmp.eq.s32.totalorder %v2411_v44, %v2166_v8  ;;  %vm680_vm7 = vcmp.eq.s32.totalorder %v2425_v46, %v2154_v2 }
  0x5d   : > { %1753 = vmatprep.subr.msk.bf16.mxu1 %vm1752_vm10, %v2040_v21  ;;  %vm1816_vm13 = vmpackc.low %vm567_vm6, %vm565_vm5  ;;  %vm394_vm5 = vcmp.eq.s32.totalorder %v2418_v45, %v2166_v8  ;;  %vm397_vm10 = vcmp.eq.s32.totalorder %v2404_v43, %v2173_v15 }
  0x5e   : > { %1817 = vmatprep.subr.msk.bf16.mxu0 %vm1816_vm13, %v2040_v21  ;;  %vm1754_vm0 = vmpackc.low %vm278_vm9, %vm276_vm8  ;;  %vm682_vm8 = vcmp.eq.s32.totalorder %v2425_v46, %v2166_v8  ;;  %vm685_vm13 = vcmp.eq.s32.totalorder %v2411_v44, %v2173_v15  ;;  %v827_v8 = vld [vmem:[#allocation3 + $0x98] sm:$0xff] }
  0x5f   : > { %1755 = vmatpush1.bf16.msk.msra.mxu1 %vm1754_vm0, %v2040_v21  ;;  %vm1818_vm3 = vmpackc.low %vm566_vm12, %vm564_vm11  ;;  %vm399_vm11 = vcmp.eq.s32.totalorder %v2404_v43, %v2176_v16  ;;  %vm396_vm0 = vcmp.eq.s32.totalorder %v2418_v45, %v2173_v15 }
  0x60   : > { %1819 = vmatpush1.bf16.msk.msra.mxu0 %vm1818_vm3, %v2040_v21  ;;  %vm1756_vm6 = vmpackc.low %vm395_vm15, %vm393_vm14  ;;  %vm687_vm14 = vcmp.eq.s32.totalorder %v2411_v44, %v2176_v16  ;;  %vm684_vm3 = vcmp.eq.s32.totalorder %v2425_v46, %v2173_v15 }
  0x61   : > { %1757 = vmatprep.subr.msk.bf16.mxu1 %vm1756_vm6, %v2040_v21  ;;  %vm1820_vm9 = vmpackc.low %vm683_vm2, %vm681_vm1  ;;  %vm398_vm1 = vcmp.eq.s32.totalorder %v2418_v45, %v2176_v16  ;;  %vm401_vm6 = vcmp.eq.s32.totalorder %v2404_v43, %v2208_v22 }
  0x62   : > { %1821 = vmatprep.subr.msk.bf16.mxu0 %vm1820_vm9, %v2040_v21  ;;  %vm1758_vm12 = vmpackc.low %vm394_vm5, %vm392_vm4  ;;  %vm686_vm4 = vcmp.eq.s32.totalorder %v2425_v46, %v2176_v16  ;;  %vm689_vm9 = vcmp.eq.s32.totalorder %v2411_v44, %v2208_v22 }
  0x63   : > { %1759 = vmatpush1.bf16.msk.msra.mxu1 %vm1758_vm12, %v2040_v21  ;;  %vm1822_vm15 = vmpackc.low %vm682_vm8, %vm680_vm7  ;;  %vm403_vm7 = vcmp.eq.s32.totalorder %v2404_v43, %v2211_v23  ;;  %vm400_vm12 = vcmp.eq.s32.totalorder %v2418_v45, %v2208_v22 }
  0x64   : > { %1823 = vmatpush1.bf16.msk.msra.mxu0 %vm1822_vm15, %v2040_v21  ;;  %vm1760_vm2 = vmpackc.low %vm399_vm11, %vm397_vm10  ;;  %vm691_vm10 = vcmp.eq.s32.totalorder %v2411_v44, %v2211_v23  ;;  %vm688_vm15 = vcmp.eq.s32.totalorder %v2425_v46, %v2208_v22 }
  0x65   : > { %1761 = vmatprep.subr.msk.bf16.mxu1 %vm1760_vm2, %v2040_v21  ;;  %vm1824_vm5 = vmpackc.low %vm687_vm14, %vm685_vm13  ;;  %vm402_vm13 = vcmp.eq.s32.totalorder %v2418_v45, %v2211_v23  ;;  %vm405_vm2 = vcmp.eq.s32.totalorder %v2404_v43, %v2234_v24 }
  0x66   : > { %1825 = vmatprep.subr.msk.bf16.mxu0 %vm1824_vm5, %v2040_v21  ;;  %vm1762_vm8 = vmpackc.low %vm398_vm1, %vm396_vm0  ;;  %vm690_vm0 = vcmp.eq.s32.totalorder %v2425_v46, %v2211_v23  ;;  %vm693_vm5 = vcmp.eq.s32.totalorder %v2411_v44, %v2234_v24 }
  0x67   : > { %1763 = vmatpush1.bf16.msk.msra.mxu1 %vm1762_vm8, %v2040_v21  ;;  %vm1826_vm11 = vmpackc.low %vm686_vm4, %vm684_vm3  ;;  %vm407_vm3 = vcmp.eq.s32.totalorder %v2404_v43, %v2237_v25  ;;  %vm404_vm8 = vcmp.eq.s32.totalorder %v2418_v45, %v2234_v24 }
  0x68   : > { %1827 = vmatpush1.bf16.msk.msra.mxu0 %vm1826_vm11, %v2040_v21  ;;  %vm1764_vm14 = vmpackc.low %vm403_vm7, %vm401_vm6  ;;  %vm695_vm6 = vcmp.eq.s32.totalorder %v2411_v44, %v2237_v25  ;;  %vm692_vm11 = vcmp.eq.s32.totalorder %v2425_v46, %v2234_v24 }
  0x69   : > { %1765 = vmatprep.subr.msk.bf16.mxu1 %vm1764_vm14, %v2040_v21  ;;  %vm1828_vm1 = vmpackc.low %vm691_vm10, %vm689_vm9  ;;  %vm406_vm9 = vcmp.eq.s32.totalorder %v2418_v45, %v2237_v25  ;;  %vm409_vm14 = vcmp.eq.s32.totalorder %v2404_v43, %v2260_v26 }
  0x6a   : > { %1829 = vmatprep.subr.msk.bf16.mxu0 %vm1828_vm1, %v2040_v21  ;;  %vm1766_vm4 = vmpackc.low %vm402_vm13, %vm400_vm12  ;;  %vm694_vm12 = vcmp.eq.s32.totalorder %v2425_v46, %v2237_v25  ;;  %vm697_vm1 = vcmp.eq.s32.totalorder %v2411_v44, %v2260_v26 }
  0x6b   : > { %1767 = vmatpush1.bf16.msk.msra.mxu1 %vm1766_vm4, %v2040_v21  ;;  %vm1830_vm7 = vmpackc.low %vm690_vm0, %vm688_vm15  ;;  %vm411_vm15 = vcmp.eq.s32.totalorder %v2404_v43, %v2263_v27  ;;  %vm408_vm4 = vcmp.eq.s32.totalorder %v2418_v45, %v2260_v26 }
  0x6c   : > { %1831 = vmatpush1.bf16.msk.msra.mxu0 %vm1830_vm7, %v2040_v21  ;;  %vm1768_vm10 = vmpackc.low %vm407_vm3, %vm405_vm2  ;;  %vm699_vm2 = vcmp.eq.s32.totalorder %v2411_v44, %v2263_v27  ;;  %vm696_vm7 = vcmp.eq.s32.totalorder %v2425_v46, %v2260_v26 }
  0x6d   : > { %1769 = vmatprep.subr.msk.bf16.mxu1 %vm1768_vm10, %v2040_v21  ;;  %vm1832_vm13 = vmpackc.low %vm695_vm6, %vm693_vm5  ;;  %vm410_vm5 = vcmp.eq.s32.totalorder %v2418_v45, %v2263_v27  ;;  %vm413_vm10 = vcmp.eq.s32.totalorder %v2404_v43, %v2286_v28 }
  0x6e   : > { %1833 = vmatprep.subr.msk.bf16.mxu0 %vm1832_vm13, %v2040_v21  ;;  %vm1770_vm0 = vmpackc.low %vm406_vm9, %vm404_vm8  ;;  %vm698_vm8 = vcmp.eq.s32.totalorder %v2425_v46, %v2263_v27  ;;  %vm701_vm13 = vcmp.eq.s32.totalorder %v2411_v44, %v2286_v28 }
  0x6f   : > { %1771 = vmatpush1.bf16.msk.msra.mxu1 %vm1770_vm0, %v2040_v21  ;;  %vm1834_vm3 = vmpackc.low %vm694_vm12, %vm692_vm11  ;;  %vm415_vm11 = vcmp.eq.s32.totalorder %v2404_v43, %v2289_v29  ;;  %vm412_vm0 = vcmp.eq.s32.totalorder %v2418_v45, %v2286_v28 }
  0x70   : > { %1835 = vmatpush1.bf16.msk.msra.mxu0 %vm1834_vm3, %v2040_v21  ;;  %vm1772_vm6 = vmpackc.low %vm411_vm15, %vm409_vm14  ;;  %vm703_vm14 = vcmp.eq.s32.totalorder %v2411_v44, %v2289_v29  ;;  %vm700_vm3 = vcmp.eq.s32.totalorder %v2425_v46, %v2286_v28 }
  0x71   : > { %1773 = vmatprep.subr.msk.bf16.mxu1 %vm1772_vm6, %v2040_v21  ;;  %vm1836_vm9 = vmpackc.low %vm699_vm2, %vm697_vm1  ;;  %vm414_vm1 = vcmp.eq.s32.totalorder %v2418_v45, %v2289_v29  ;;  %vm417_vm6 = vcmp.eq.s32.totalorder %v2404_v43, %v2310_v31 }
  0x72   : > { %1837 = vmatprep.subr.msk.bf16.mxu0 %vm1836_vm9, %v2040_v21  ;;  %vm1774_vm12 = vmpackc.low %vm410_vm5, %vm408_vm4  ;;  %vm702_vm4 = vcmp.eq.s32.totalorder %v2425_v46, %v2289_v29  ;;  %vm705_vm9 = vcmp.eq.s32.totalorder %v2411_v44, %v2310_v31 }
  0x73   : > { %1775 = vmatpush1.bf16.msk.msra.mxu1 %vm1774_vm12, %v2040_v21  ;;  %vm1838_vm15 = vmpackc.low %vm698_vm8, %vm696_vm7  ;;  %vm419_vm7 = vcmp.eq.s32.totalorder %v2404_v43, %v2318_v32  ;;  %vm416_vm12 = vcmp.eq.s32.totalorder %v2418_v45, %v2310_v31 }
  0x74   : > { %1839 = vmatpush1.bf16.msk.msra.mxu0 %vm1838_vm15, %v2040_v21  ;;  %vm1776_vm2 = vmpackc.low %vm415_vm11, %vm413_vm10  ;;  %vm707_vm10 = vcmp.eq.s32.totalorder %v2411_v44, %v2318_v32  ;;  %vm704_vm15 = vcmp.eq.s32.totalorder %v2425_v46, %v2310_v31 }
  0x75   : > { %1777 = vmatprep.subr.msk.bf16.mxu1 %vm1776_vm2, %v2040_v21  ;;  %vm1840_vm5 = vmpackc.low %vm703_vm14, %vm701_vm13  ;;  %vm418_vm13 = vcmp.eq.s32.totalorder %v2418_v45, %v2318_v32  ;;  %vm421_vm2 = vcmp.eq.s32.totalorder %v2404_v43, %v2351_v36 }
  0x76   : > { %1841 = vmatprep.subr.msk.bf16.mxu0 %vm1840_vm5, %v2040_v21  ;;  %vm1778_vm8 = vmpackc.low %vm414_vm1, %vm412_vm0  ;;  %vm706_vm0 = vcmp.eq.s32.totalorder %v2425_v46, %v2318_v32  ;;  %vm709_vm5 = vcmp.eq.s32.totalorder %v2411_v44, %v2351_v36 }
  0x77   : > { %1779 = vmatpush1.bf16.msk.msra.mxu1 %vm1778_vm8, %v2040_v21  ;;  %vm1842_vm11 = vmpackc.low %vm702_vm4, %vm700_vm3  ;;  %vm423_vm3 = vcmp.eq.s32.totalorder %v2404_v43, %v2363_v38  ;;  %vm420_vm8 = vcmp.eq.s32.totalorder %v2418_v45, %v2351_v36 }
  0x78   : > { %1843 = vmatpush1.bf16.msk.msra.mxu0 %vm1842_vm11, %v2040_v21  ;;  %vm1780_vm14 = vmpackc.low %vm419_vm7, %vm417_vm6  ;;  %vm711_vm6 = vcmp.eq.s32.totalorder %v2411_v44, %v2363_v38  ;;  %vm708_vm11 = vcmp.eq.s32.totalorder %v2425_v46, %v2351_v36 }
  0x79   : > { %1781 = vmatprep.subr.msk.bf16.mxu1 %vm1780_vm14, %v2040_v21  ;;  %vm1844_vm1 = vmpackc.low %vm707_vm10, %vm705_vm9  ;;  %vm422_vm9 = vcmp.eq.s32.totalorder %v2418_v45, %v2363_v38 }
  0x7a   : > { %1845 = vmatprep.subr.msk.bf16.mxu0 %vm1844_vm1, %v2040_v21  ;;  %vm1782_vm4 = vmpackc.low %vm418_vm13, %vm416_vm12  ;;  %vm710_vm12 = vcmp.eq.s32.totalorder %v2425_v46, %v2363_v38  ;;  %vm1360_vm1 = vcmp.lt.s32.totalorder %v215_v0, 256 }
  0x7b   : > { %1783 = vmatpush1.bf16.msk.msra.mxu1 %vm1782_vm4, %v2040_v21  ;;  %vm1846_vm7 = vmpackc.low %vm706_vm0, %vm704_vm15  ;;  %vm1203_vm0 = vcmask 261120  }
  0x7c   : > { %1847 = vmatpush1.bf16.msk.msra.mxu0 %vm1846_vm7, %v2040_v21  ;;  %vm1784_vm10 = vmpackc.low %vm423_vm3, %vm421_vm2 }
  0x7d   : > { %1785 = vmatprep.subr.msk.bf16.mxu1 %vm1784_vm10, %v2040_v21  ;;  %vm1848_vm13 = vmpackc.low %vm711_vm6, %vm709_vm5 }
  0x7e   : > { %1849 = vmatprep.subr.msk.bf16.mxu0 %vm1848_vm13, %v2040_v21  ;;  %vm1786_vm14 = vmpackc.low %vm422_vm9, %vm420_vm8 }
  0x7f   : > { %1787 = vmatpush1.bf16.msk.msra.mxu1 %vm1786_vm14, %v2040_v21  ;;  %vm1850_vm15 = vmpackc.low %vm710_vm12, %vm708_vm11 }
  0x80   : > { %1851 = vmatpush1.bf16.msk.msra.mxu0 %vm1850_vm15, %v2040_v21 }
  0x82   : > { %1021 = vmatmul.mubr.f32.vlgmr.msra.gmra.mrb[0].mxu1 %v808_v55 }
  0x83   : > { %1116 = vmatmul.mubr.f32.vlgmr.msra.gmra.mrb[0].mxu0 %v810_v56  ;;  %1026 = vmatprep.mubr.f32.mxu1 %v813_v57 }
  0x84   : > { %1121 = vmatprep.mubr.f32.mxu0 %v815_v58 }
  0x86   : > { %1027 = vmatmul.mubr.f32.gmra.mrb[2].mxu1 %v812_v59 }
  0x87   : > { %1122 = vmatmul.mubr.f32.gmra.mrb[2].mxu0 %v814_v60  ;;  %1032 = vmatprep.mubr.f32.mxu1 %v817_v61  ;;  %v1191_v60 = vld [vmem:[%s2681_s2] sm:$0xff]  ;;  %v1192_v61 = vld [vmem:[%s2681_s2 + $0x8] sm:$0xff] }
  0x88   : > { %1127 = vmatprep.mubr.f32.mxu0 %v819_v62 }
  0x8a   : > { %1033 = vmatmul.mubr.f32.gmra.mrb[4].mxu1 %v816_v63 }
  0x8b   : > { %1128 = vmatmul.mubr.f32.gmra.mrb[4].mxu0 %v818_v1  ;;  %1038 = vmatprep.mubr.f32.mxu1 %v821_v3 }
  0x8c   : > { %1133 = vmatprep.mubr.f32.mxu0 %v823_v4 }
  0x8e   : > { %1039 = vmatmul.mubr.f32.gmra.mrb[6].mxu1 %v820_v5 }
  0x8f   : > { %1134 = vmatmul.mubr.f32.gmra.mrb[6].mxu0 %v822_v6  ;;  %1044 = vmatprep.mubr.f32.mxu1 %v825_v7 }
  0x90   : > { %1139 = vmatprep.mubr.f32.mxu0 %v827_v8 }
  0x92   : > { %1045 = vmatmul.mubr.f32.gmra.mrb[8].mxu1 %v824_v9 }
  0x93   : > { %1140 = vmatmul.mubr.f32.gmra.mrb[8].mxu0 %v826_v10  ;;  %1280 = vmatprep.mubr.f32.mxu1 %v2041_v11 }
  0x94   : > { %1274 = vmatprep.mubr.f32.mxu0 %v2041_v11 }
  0xb6   : > { %v1158_v12 = vpop.permute.xlu0 %1157  ;;  %v1168_v28 = vpop.permute.xlu1 %1167 }
  0xba   : > { %v1163_v25 = vpop.permute.xlu0 %1162 }
  0xbb   : > { %v1173_v49 = vpop.permute.xlu1 %1172 }
  0xbe   : > { %v1196_v6 = vpop.permute.xlu0 %1195 }
  0xbf   : > { %v1201_v7 = vpop.permute.xlu1 %1200 }
 0x155   : > { %v1022_v13 = vpop.f32.mrb[0].mxu1 }
 0x156   : > { %v1117_v14 = vpop.f32.mrb[0].mxu0  ;;  %v1024_v15 = vpop.f32.mrb[1].mxu1 }
 0x157   : > { %v1118_v16 = vadd.f32 %v1117_v14, %v1022_v13  ;;  %v1119_v17 = vpop.f32.mrb[1].mxu0 }
 0x158   : > { %v1120_v18 = vadd.f32 %v1119_v17, %v1024_v15 }
 0x159   : > { %v1028_v19 = vpop.f32.mrb[2].mxu1  ;;  %v1175_v22 = vadd.f32 %v1158_v12, %v1118_v16 }
 0x15a   : > { %v1123_v20 = vpop.f32.mrb[2].mxu0  ;;  %v1030_v21 = vpop.f32.mrb[3].mxu1  ;;  %v1176_v26 = vadd.f32 %v1158_v12, %v1120_v18 }
 0x15b   : > { %v1124_v23 = vadd.f32 %v1123_v20, %v1028_v19  ;;  %v1125_v24 = vpop.f32.mrb[3].mxu0  ;;  %v1183_v34 = vmax.f32 %v1175_v22, 0.0  ;;  %v1294_v18 = vpop.permute.xlu0 %1293 }
 0x15c   : > { %v1126_v27 = vadd.f32 %v1125_v24, %v1030_v21  ;;  %v1184_v38 = vmax.f32 %v1176_v26, 0.0  ;;  %v1299_v19 = vpop.permute.xlu1 %1298 }
 0x15d   : > { %v1177_v29 = vadd.f32 %v1163_v25, %v1124_v23  ;;  %v1034_v30 = vpop.f32.mrb[4].mxu1 }
 0x15e   : > { %v1178_v31 = vadd.f32 %v1163_v25, %v1126_v27  ;;  %v1129_v32 = vpop.f32.mrb[4].mxu0  ;;  %v1036_v33 = vpop.f32.mrb[5].mxu1 }
 0x15f   : > { %v1185_v35 = vmax.f32 %v1177_v29, 0.0  ;;  %v1130_v36 = vadd.f32 %v1129_v32, %v1034_v30  ;;  %v1131_v37 = vpop.f32.mrb[5].mxu0 }
 0x160   : > { %v1186_v39 = vmax.f32 %v1178_v31, 0.0  ;;  %v1132_v40 = vadd.f32 %v1131_v37, %v1036_v33 }
 0x161   : > { %v1854_v41 = vpack.c.bf16 %v1185_v35, %v1183_v34  ;;  %v1040_v42 = vpop.f32.mrb[6].mxu1  ;;  %v1179_v46 = vadd.f32 %v1168_v28, %v1130_v36 }
 0x162   : > { %v1135_v43 = vpop.f32.mrb[6].mxu0  ;;  %v1042_v44 = vpop.f32.mrb[7].mxu1  ;;  %v1852_v45 = vpack.c.bf16 %v1186_v39, %v1184_v38  ;;  %v1180_v50 = vadd.f32 %v1168_v28, %v1132_v40 }
 0x163   : > { %v1136_v47 = vadd.f32 %v1135_v43, %v1040_v42  ;;  %v1137_v48 = vpop.f32.mrb[7].mxu0  ;;  %v1187_v54 = vmax.f32 %v1179_v46, 0.0 }
 0x164   : > { %v1138_v51 = vadd.f32 %v1137_v48, %v1042_v44  ;;  %1853 = vmatprep.subr.bf16.mxu0 %v1852_v45  ;;  %1860 = vmatprep.subr.bf16.mxu1 %v1852_v45  ;;  %v1188_v56 = vmax.f32 %v1180_v50, 0.0 }
 0x165   : > { %v1181_v52 = vadd.f32 %v1173_v49, %v1136_v47  ;;  %1855 = vmatpush1.bf16.msra.mxu0 %v1854_v41  ;;  %1862 = vmatpush1.bf16.msra.mxu1 %v1854_v41  ;;  %v1046_v62 = vpop.f32.mrb[8].mxu1  ;;  %v1324_v41 = vpop.permute.xlu0 %1323 }
 0x166   : > { %v1182_v53 = vadd.f32 %v1173_v49, %v1138_v51  ;;  %v1141_v63 = vpop.f32.mrb[8].mxu0  ;;  %v1048_v3 = vpop.f32.mrb[9].mxu1  ;;  %v2042_v51 = vmov 1966171168  }
 0x167   : > { %v1189_v55 = vmax.f32 %v1181_v52, 0.0  ;;  %v1142_v1 = vadd.f32 %v1141_v63, %v1046_v62  ;;  %v1143_v4 = vpop.f32.mrb[9].mxu0  ;;  %v1344_v52 = vunpack.c.l.s4 %v2042_v51 }
 0x168   : > { %v1190_v57 = vmax.f32 %v1182_v53, 0.0  ;;  %v1144_v5 = vadd.f32 %v1143_v4, %v1048_v3 }
 0x169   : > { %v1858_v58 = vpack.c.bf16 %v1189_v55, %v1187_v54  ;;  %v1345_v53 = vunpack.c.0.s8 %v1344_v52 }
 0x16a   : > { %v1856_v59 = vpack.c.bf16 %v1190_v57, %v1188_v56 }
 0x16b   : > { %v1348_v55 = vsub.s32 %v1345_v53, %v2154_v2 }
 0x16c   : > { %1857 = vmatprep.subr.bf16.mxu0 %v1856_v59  ;;  %1861 = vmatprep.subr.bf16.mxu1 %v1856_v59 }
 0x16d   : > { %1859 = vmatpush1.bf16.msra.mxu0 %v1858_v58  ;;  %1863 = vmatpush1.bf16.msra.mxu1 %v1858_v58 }
 0x170   : > { %1586 = vmatmul.mubr.msk.f32.vlgmr.msra.gmra.mrb[10].mxu0 %vm1203_vm0, %v1191_v60  ;;  %1587 = vmatmul.mubr.msk.f32.vlgmr.msra.gmra.mrb[10].mxu1 %vm1203_vm0, %v1192_v61 }
 0x243   : > { %v1276_v8 = vpop.f32.mrb[10].mxu0  ;;  %v1282_v9 = vpop.f32.mrb[10].mxu1 }
 0x244   : > { %v1277_v10 = vadd.f32 %v1276_v8, %v1196_v6  ;;  %v1283_v11 = vadd.f32 %v1282_v9, %v1201_v7  ;;  %v1278_v12 = vpop.f32.mrb[11].mxu0  ;;  %v1284_v13 = vpop.f32.mrb[11].mxu1 }
 0x245   : > { %v1279_v14 = vadd.f32 %v1278_v12, %v1196_v6  ;;  %v1285_v15 = vadd.f32 %v1284_v13, %v1201_v7 }
 0x246   : > { %v1287_v16 = vmax.f32 %v1277_v10, 0.0  ;;  %v1289_v17 = vmax.f32 %v1283_v11, 0.0 }
 0x247   : > { %v1288_v20 = vmax.f32 %v1279_v14, 0.0  ;;  %v1290_v21 = vmax.f32 %v1285_v15, 0.0 }
 0x248   : > { %v1301_v22 = vmul.f32 %v1294_v18, %v1287_v16  ;;  %v1303_v23 = vmul.f32 %v1299_v19, %v1289_v17 }
 0x249   : > { %v1302_v24 = vmul.f32 %v1294_v18, %v1288_v20  ;;  %v1304_v25 = vmul.f32 %v1299_v19, %v1290_v21 }
 0x24a   : > { %v1305_v26 = vadd.f32 %v1303_v23, %v1301_v22 }
 0x24b   : > { %v1312_v27 = vadd.f32 %v1304_v25, %v1302_v24 }
 0x24c   : > { %v1306_v28 = vrot.slane %v1305_v26, 4 }
 0x24d   : > { %v1313_v29 = vrot.slane %v1312_v27, 4 }
 0x24e   : > { %v1307_v30 = vadd.f32 %v1306_v28, %v1305_v26 }
 0x24f   : > { %v1314_v31 = vadd.f32 %v1313_v29, %v1312_v27 }
 0x250   : > { %v1308_v32 = vrot.slane %v1307_v30, 2 }
 0x251   : > { %v1315_v33 = vrot.slane %v1314_v31, 2 }
 0x252   : > { %v1309_v34 = vadd.f32 %v1308_v32, %v1307_v30 }
 0x253   : > { %v1316_v35 = vadd.f32 %v1315_v33, %v1314_v31 }
 0x254   : > { %v1310_v36 = vrot.slane %v1309_v34, 1 }
 0x255   : > { %v1317_v37 = vrot.slane %v1316_v35, 1 }
 0x256   : > { %v1311_v38 = vadd.f32 %v1310_v36, %v1309_v34 }
 0x257   : > { %v1318_v39 = vadd.f32 %v1317_v37, %v1316_v35 }
 0x258   : > { %v1319_v40 = vadd.f32 %v1311_v38, %v1142_v1 }
 0x259   : > { %v1320_v42 = vadd.f32 %v1318_v39, %v1144_v5 }
 0x25a   : > { %v1326_v43 = vadd.f32 %v1324_v41, %v1319_v40 }
 0x25b   : > { %v1327_v44 = vadd.f32 %v1324_v41, %v1320_v42 }
 0x25c   : > { %v1588_v45 = vmul.f32 -1.442695, %v1326_v43 }
 0x25d   : > { %v1589_v46 = vmul.f32 -1.442695, %v1327_v44 }
 0x25e   : > { %1932 = vpow2.f32 %v1588_v45 }
 0x25f   : > { %1934 = vpow2.f32 %v1589_v46 }
 0x268   : > { %v1933_v47 = vpop.eup %1932 }
 0x269   : > { %v1935_v48 = vpop.eup %1934  ;;  %v1334_v49 = vadd.f32 1.0, %v1933_v47 }
 0x26a   : > { %v1335_v50 = vadd.f32 1.0, %v1935_v48 }
 0x26b   : > { %1936 = vrcp.f32 %v1334_v49 }
 0x26c   : > { %1938 = vrcp.f32 %v1335_v50 }
 0x275   : > { %v1937_v54 = vpop.eup %1936 }
 0x276   : > { %v1939_v56 = vpop.eup %1938 }
 0x277   : > { %v1342_v57 = vcombine.low %v1937_v54, %v1939_v56 }
 0x279   : > { %v1349_v58 = vrot.slane %v1342_v57, %v1348_v55 }
 0x27b   : > { %v1356_v59 = vrot.slane %v1349_v58, %v1348_v55 }
 0x27d   : > { %1362 = vst.msk [vmem:[%s206_s13] sm:$0x3] %vm1360_vm1, %v1356_v59 }
 0x27e   : > { %1981 = shalt.err (!%p1978_p7)
}
 0x27f   : > { %s1982_s5 = scalar_lea.hbm %s2637_s23, 32  ;;  %s1986_s8 = scalar_lea.hbm %s2683_s4, 64 }
 0x280   : > { %p1983_p8 = scmp.ne.s32.totalorder %s2637_s23, %s1982_s5  ;;  %p1987_p1 = scmp.lt.u32.totalorder %s2637_s23, %s2683_s4 }
 0x281   : > { %p1988_p0 = scmp.lt.u32.totalorder %s1986_s8, %s1982_s5  ;;  %p1990_p6 = scmp.lt.u32.totalorder %s1982_s5, %s2637_s23 }
 0x282   : > { %p1984_p11 = pnand %p1983_p8, %p2694_p9 }
 0x283   : > { %p1989_p5 = por %p1988_p0, %p1987_p1 }
 0x284   : > { %p1985_p13 = pneg %p1984_p11 }
 0x285   : > { %p1991_p10 = por %p1990_p6, %p1989_p5 }
 0x287   : > { %p1992_p12 = pnand %p1991_p10, %p1985_p13 }
 0x289   : > { %1995 = shalt.err (!%p1992_p12)
}
 0x28a   : > { %1878 = dma.vmem_to_hbm [thread:$0]  (%p2694_p9), %s2639_s14, 32, %s2637_s23, %s1364_s27  }
 0x28b PF: > { %p1890_p2 = scmp.ge.s32.totalorder %s2034_s18, 2  ;;  %s1390_s11 = sand.u32 1, %s2022_s15  }
 0x28c   : > { %p2695_p3 = scmp.ne.s32.totalorder %s2688_s26, 0  ;;  %s1391_s12 = scalar_lea.sflag [#allocation5], %s1390_s11 }
 0x28e   : > { %p1885_p4 = pnand %p1890_p2, %p2695_p3 }
 0x290   : > { %2017 = dma.done.wait (!%p1885_p4), %s1391_s12, 32  }
 0x291   : > { %2019 = vsyncadd (!%p1885_p4), %s1391_s12, 4294967264  ;;  %p15_p7 = scmp.ge.s32.totalorder %s2094_s21, 4   ;;  %s2696_s15 = smov %s2026_s16 }
 0x292   : > { %s2697_s16 = smov %s2030_s17  ;;  %s2698_s17 = smov %s2105_s24 }
 0x293   : > { %s2699_s18 = smov %s2094_s21  ;;  %17 = sbr.rel (!%p15_p7) target bundleno = 4 (0x4), region = 76 }
 0x29a   :  { %1396 = vsyncpa [#allocation4], 1 }
 0x29b   :  { %1398 = vsyncpa [#allocation4 + $0x1], 1 }
 0x29c   :  { %1399 = vsyncpa [#allocation5], 1 }
 0x29d   :  { %1401 = vsyncpa [#allocation5 + $0x1], 1 }

</bundles_post_ra>
